<compile_context>
chip_gen: v5e
topology: v5e:2x2
jax: 0.10.0
libtpu: 0.0.40
codegen_flags: <defaults>
</compile_context>

<pallas_src>
import jax
import jax.numpy as jnp
from jax.experimental import pallas as pl
from jax.experimental.pallas import tpu as pltpu


def _round_up(x, m):
    return (x + m - 1) // m * m


# ----------------------------------------------------------------------------
# Fast path: whole contraction per step, W resident in VMEM, ReLU fused into
# the single store.
# ----------------------------------------------------------------------------
def _dimreduction_fused_kernel(x_ref, w_ref, o_ref):
    o_ref[...] = jnp.maximum(
        jnp.dot(x_ref[...], w_ref[...], preferred_element_type=jnp.float32),
        0.0,
    ).astype(o_ref.dtype)


# ----------------------------------------------------------------------------
# Tiled fallback, f32 output: accumulate directly into o_ref (its block index
# is constant across the k axis), ReLU applied in place on the last k step.
# ----------------------------------------------------------------------------
def _dimreduction_tiled_f32_kernel(x_ref, w_ref, o_ref):
    k = pl.program_id(2)

    @pl.when(k == 0)
    def _():
        o_ref[...] = jnp.zeros_like(o_ref)

    o_ref[...] += jnp.dot(
        x_ref[...], w_ref[...], preferred_element_type=jnp.float32
    )

    @pl.when(k == pl.num_programs(2) - 1)
    def _():
        o_ref[...] = jnp.maximum(o_ref[...], 0.0)


# ----------------------------------------------------------------------------
# Tiled fallback, non-f32 output: f32 scratch accumulator, fused ReLU + cast
# epilogue on the last k step.
# ----------------------------------------------------------------------------
def _dimreduction_tiled_acc_kernel(x_ref, w_ref, o_ref, acc_ref):
    k = pl.program_id(2)

    @pl.when(k == 0)
    def _():
        acc_ref[...] = jnp.zeros_like(acc_ref)

    acc_ref[...] += jnp.dot(
        x_ref[...], w_ref[...], preferred_element_type=jnp.float32
    )

    @pl.when(k == pl.num_programs(2) - 1)
    def _():
        o_ref[...] = jnp.maximum(acc_ref[...], 0.0).astype(o_ref.dtype)


@jax.jit
def dim_reduction(x, w):
    """relu(x @ w).  x: (N, C), w: (C, M) (transpose of torch fc1.weight)."""
    N, C = x.shape
    C2, M = w.shape
    assert C == C2
    out_dtype = x.dtype
    out_b = jnp.dtype(out_dtype).itemsize

    # bf16 feed to the MXU (f32 accumulation inside the kernel).
    xb = x.astype(jnp.bfloat16)
    wb = w.astype(jnp.bfloat16)
    bf16_b = 2

    sub = 16  # bf16 sublane multiple (min tile is (16, 128))

    # Generation-aware VMEM budget.
    try:
        info = pltpu.get_tpu_info()
        phys_vmem = getattr(info, "vmem_capacity_bytes", 64 << 20)
    except Exception:  # pragma: no cover - fallback if query unavailable
        phys_vmem = 64 << 20
    vmem_limit = min(int(phys_vmem * 3 // 4), 100 << 20)   # 48 MiB v7x, 96 MiB v5e/v6e
    fused_budget = int(vmem_limit * 0.85)

    cost = pl.CostEstimate(
        flops=2 * N * C * M,
        transcendentals=0,
        bytes_accessed=bf16_b * (N * C + C * M) + out_b * N * M,
    )

    # ---- fused-path row tile: >=2 parallel blocks when N allows (megacore),
    # ---- 128-multiples for larger N, bf16 sublane alignment otherwise.
    if N >= 1024:
        tm = 512
    elif N >= 256:
        tm = 128
    elif N >= 2 * sub:
        tm = min(128, _round_up((N + 1) // 2, sub))
    else:
        tm = _round_up(max(N, 1), sub)

    # Accurate fused working set: x and out double-buffered, W also
    # double-buffered (Pallas default even with a constant block index).
    fused_bytes = (2 * tm * C * bf16_b
                   + 2 * C * M * bf16_b
                   + 2 * tm * M * out_b)

    if fused_bytes <= fused_budget:
        return pl.pallas_call(
            _dimreduction_fused_kernel,
            out_shape=jax.ShapeDtypeStruct((N, M), out_dtype),
            grid_spec=pltpu.PrefetchScalarGridSpec(
                num_scalar_prefetch=0,
                grid=(pl.cdiv(N, tm),),
                in_specs=[
                    pl.BlockSpec((tm, C), lambda i: (i, 0)),
                    # Constant block index: W is DMA'd once, stays resident.
                    pl.BlockSpec((C, M), lambda i: (0, 0)),
                ],
                out_specs=pl.BlockSpec((tm, M), lambda i: (i, 0)),
            ),
            compiler_params=pltpu.CompilerParams(
                dimension_semantics=("parallel",),
                vmem_limit_bytes=vmem_limit,
            ),
            cost_estimate=cost,
        )(xb, wb)

    # ---- tiled fallback for very large C / M: 512-class tiles --------------
    if N >= 1024:
        tm_fb = 512
    elif N >= 512:
        tm_fb = 256
    else:
        tm_fb = _round_up(max(N, 1), sub)
    tn = 512 if M >= 512 else _round_up(M, 128)
    tk = 512 if C >= 512 else _round_up(C, 128)

    # Only the contraction dim must be zero-padded (garbage there would
    # corrupt valid outputs); ragged N / M edge blocks are masked by Pallas.
    c_pad = _round_up(C, tk)
    if c_pad != C:
        xb = jnp.pad(xb, ((0, 0), (0, c_pad - C)))
        wb = jnp.pad(wb, ((0, c_pad - C), (0, 0)))

    is_f32_out = jnp.dtype(out_dtype) == jnp.dtype(jnp.float32)
    kernel = (_dimreduction_tiled_f32_kernel if is_f32_out
              else _dimreduction_tiled_acc_kernel)
    scratch = [] if is_f32_out else [pltpu.VMEM((tm_fb, tn), jnp.float32)]

    return pl.pallas_call(
        kernel,
        out_shape=jax.ShapeDtypeStruct((N, M), out_dtype),
        grid_spec=pltpu.PrefetchScalarGridSpec(
            num_scalar_prefetch=0,
            grid=(pl.cdiv(N, tm_fb), pl.cdiv(M, tn), c_pad // tk),
            in_specs=[
                pl.BlockSpec((tm_fb, tk), lambda i, j, k: (i, k)),
                pl.BlockSpec((tk, tn), lambda i, j, k: (k, j)),
            ],
            out_specs=pl.BlockSpec((tm_fb, tn), lambda i, j, k: (i, j)),
            scratch_shapes=scratch,
        ),
        compiler_params=pltpu.CompilerParams(
            dimension_semantics=("parallel", "parallel", "arbitrary"),
            vmem_limit_bytes=vmem_limit,
        ),
        cost_estimate=cost,
    )(xb, wb)


def make_params(key, n_channels, m_dim, dtype=jnp.float32):
    """Deterministic xavier_normal_ init for fc1 (bias=False in the module)."""
    std = (2.0 / (n_channels + m_dim)) ** 0.5
    # PyTorch weight shape is (m_dim, n_channels); we store the transpose.
    w_t = std * jax.random.normal(key, (m_dim, n_channels), dtype=jnp.float32)
    return jnp.asarray(w_t.T, dtype=dtype)  # (n_channels, m_dim)


# TODO(synk): dropout branch (self.dropout=True) not implemented; the module
# default (dropout=False) never exercises it in forward.


if __name__ == "__main__":
    key = jax.random.PRNGKey(0)
    k_x, k_w = jax.random.split(key)

    n_instances = 64       # rows of x (e.g. instances in a MIL bag)
    n_channels = 256       # input feature dim
    m_dim = 512            # module default output dim

    x = jax.random.normal(k_x, (n_instances, n_channels), dtype=jnp.float32)
    w = make_params(k_w, n_channels, m_dim)

    out = dim_reduction(x, w)
    out = jax.block_until_ready(out)

    # Reference computed with the same bf16 inputs / f32 accumulation.
    ref = jnp.maximum(
        jnp.dot(x.astype(jnp.bfloat16), w.astype(jnp.bfloat16),
                preferred_element_type=jnp.float32),
        0.0,
    )
    assert out.shape == (n_instances, m_dim)
    assert out.dtype == x.dtype
    assert jnp.allclose(out, ref, atol=2e-2, rtol=2e-2)

    print("KERNEL_OK")
</pallas_src>

<mosaic_0001>
module attributes {stable_mosaic.version = 11 : i64} {
  func.func @_dimreduction_fused_kernel(%arg0: i32, %arg1: memref<32x256xbf16, #tpu.memory_space<vmem>>, %arg2: memref<256x512xbf16, #tpu.memory_space<vmem>>, %arg3: memref<32x512xf32, #tpu.memory_space<vmem>>) attributes {dimension_semantics = [#tpu.dimension_semantics<parallel>], iteration_bounds = array<i64: 2>, scalar_prefetch = 0 : i64, scratch_operands = 0 : i64, tpu.core_type = #tpu.core_type<tc>, window_params = [{transform_indices = @transform_0, window_bounds = array<i64: 32, 256>}, {pipeline_mode = #tpu.pipeline_mode<synchronous>, transform_indices = @transform_1, window_bounds = array<i64: 256, 512>}, {transform_indices = @transform_2, window_bounds = array<i64: 32, 512>}]} {
    %c0 = arith.constant 0 : index
    %c0_0 = arith.constant 0 : index
    %0 = vector.load %arg1[%c0, %c0_0] : memref<32x256xbf16, #tpu.memory_space<vmem>>, vector<32x256xbf16>
    %c0_1 = arith.constant 0 : index
    %c0_2 = arith.constant 0 : index
    %1 = vector.load %arg2[%c0_1, %c0_2] : memref<256x512xbf16, #tpu.memory_space<vmem>>, vector<256x512xbf16>
    %cst = arith.constant dense<0.000000e+00> : vector<32x512xf32>
    %2 = tpu.matmul %0, %1, %cst {dimension_numbers = #tpu.dot_dimension_numbers<[1], [0], [0], [1], [0, 0, 1, 1], [], []>} : vector<32x256xbf16>, vector<256x512xbf16>, vector<32x512xf32> -> vector<32x512xf32>
    %cst_3 = arith.constant 0.000000e+00 : f32
    %3 = vector.broadcast %cst_3 : f32 to vector<32x512xf32>
    %4 = arith.maximumf %2, %3 : vector<32x512xf32>
    %c0_4 = arith.constant 0 : index
    %c0_5 = arith.constant 0 : index
    %5 = vector.load %arg3[%c0_4, %c0_5] : memref<32x512xf32, #tpu.memory_space<vmem>>, vector<32x512xf32>
    tpu.vector_store %arg3[%c0_4, %c0_5], %4 {strides = array<i32>} : memref<32x512xf32, #tpu.memory_space<vmem>>, vector<32x512xf32>,
    return
  }
  func.func @transform_0(%arg0: i32) -> (i32, i32) {
    %c0_i32 = arith.constant 0 : i32
    %c0_i32_0 = arith.constant 0 : i32
    return %arg0, %c0_i32 : i32, i32
  }
  func.func @transform_1(%arg0: i32) -> (i32, i32) {
    %c0_i32 = arith.constant 0 : i32
    %c0_i32_0 = arith.constant 0 : i32
    %c0_i32_1 = arith.constant 0 : i32
    return %c0_i32, %c0_i32_0 : i32, i32
  }
  func.func @transform_2(%arg0: i32) -> (i32, i32) {
    %c0_i32 = arith.constant 0 : i32
    %c0_i32_0 = arith.constant 0 : i32
    return %arg0, %c0_i32 : i32, i32
  }
}

</mosaic_0001>

<bundles_post_ra>
// kernel: dim_reduction.1
= control target key start
LH: loop header
LB: loop body
LE: loop exit
PB: predicated region body
PF: predicated region fallthrough
CT: control target
= control target key end

     0   :  { %7 = vsyncpa [#allocation3], 0  ;;  %s1823_s0 = inlined_call_operand.vmem [shape: bf16[64,256], index: 0, kind: input, shape index: {}]   ;;  %s1824_s1 = inlined_call_operand.vmem [shape: bf16[256,512], index: 1, kind: input, shape index: {}]   ;;  %s1825_s2 = inlined_call_operand.hbm [shape: f32[64,512], index: 2, kind: output, shape index: {}]  }
   0x1   :  { %9 = vsyncpa [#allocation3 + $0x1], 0  ;;  %s1298_s9 = smov 0   ;;  %s1300_s10 = smov 0  }
   0x2   :  { %s1302_s11 = smov 0   ;;  %s1304_s12 = smov 0  }
   0x3 LB: > { %s1319_s13 = sadd.s32 4294967295, %s1279_s12   ;;  %s819_s14 = sadd.s32 4294967294, %s1279_s12   ;;  %s1279_s12 = sphi %s1304_s12, %s1831_s12   ;;  %s1275_s11 = sphi %s1302_s11, %s1830_s11   ;;  %s1271_s10 = sphi %s1300_s10, %s1829_s10   ;;  %s1267_s9 = sphi %s1298_s9, %s1828_s9  }
   0x4   : > { %s1323_s15 = sadd.s32 1, %s1279_s12   ;;  %s69_s16 = sadd.s32 1, %s1275_s11 }
   0x5   : > { %s66_s17 = ssub.s32 %s1279_s12, %s1323_s15  ;;  %p79_p0 = scmp.ne.s32.totalorder %s1275_s11, %s1271_s10 }
   0x6   : > { %p67_p1 = scmp.eq.s32.totalorder %s66_s17, 0  ;;  %p80_p2 = scmp.eq.s32.totalorder %s1319_s13, 1 }
   0x7   : > { %p85_p3 = scmp.ne.s32.totalorder %s1271_s10, %s1267_s9  ;;  %p86_p4 = scmp.eq.s32.totalorder %s819_s14, 1 }
   0x8   : > { %s1334_s18 = scalar_select %p67_p1, %s1275_s11, %s69_s16  }
   0x9   : > { %p1336_p5 = por %p80_p2, %p79_p0  ;;  %p1340_p6 = por %p86_p4, %p85_p3 }
   0xa   : > { %p822_p7 = scmp.ge.s32.totalorder %s1279_s12, 1  ;;  %p117_p8 = scmp.lt.s32.totalorder %s1279_s12, 3 }
   0xc   : > { %p118_p9 = pnand %p822_p7, %p117_p8 }
   0xd   : > { %s824_s6 = sshll.u32 (!%p118_p9), %s1319_s13, 2  ;;  %s137_s17 = sand.u32 (!%p118_p9), 1, %s1271_s10  }
   0xe   : > { %121 = sbr.rel (%p118_p9) target bundleno = 251 (0xfb), region = 28  ;;  %p141_p10 = scmp.lt.s32.totalorder (!%p118_p9), %s824_s6, 7 }
   0xf   : > { %s823_s21 = sshll.u32 (!%p118_p9), %s137_s17, 7  ;;  %s1175_s23 = sshll.u32 (!%p118_p9), %s1319_s13, 7 }
  0x10   : > { %s1771_s22 = scalar_lea.vmem (!%p118_p9), [#allocation2], %s823_s21  ;;  %s753_s27 = scalar_lea.hbm (!%p118_p9), %s1825_s2, %s1175_s23 }
  0x11   : > { %s741_s13 = scalar_lea.sflag (!%p118_p9), [#allocation3], %s137_s17  ;;  %s1237_s4 = scalar_lea.hbm (!%p118_p9), %s1825_s2, 256 }
  0x13   : > { %v957_v0 = vld [vmem:[%s1824_s1 + $0xe0] sm:$0xf]  ;;  %v1140_v1 = vld [vmem:[%s1824_s1 + $0xec] sm:$0xf0]  ;;  %v1138_v5 = vld [vmem:[%s1824_s1 + $0xe4] sm:$0xf] }
  0x14   : > { %v1085_v2 = vld [vmem:[%s1824_s1 + $0x1e0] sm:$0xf]  ;;  %v958_v3 = vor.u32 %v1140_v1, %v957_v0  ;;  %v1172_v4 = vld [vmem:[%s1824_s1 + $0x1ec] sm:$0xf0]  ;;  %v959_v6 = vld [vmem:[%s1824_s1 + $0xf0] sm:$0xf0] }
  0x15   : > { %v1086_v7 = vor.u32 %v1172_v4, %v1085_v2  ;;  %v962_v8 = vor.u32 %v1138_v5, %v959_v6  ;;  %v1170_v9 = vld [vmem:[%s1824_s1 + $0x1e4] sm:$0xf]  ;;  %v1087_v10 = vld [vmem:[%s1824_s1 + $0x1f0] sm:$0xf0]  ;;  %v941_v11 = vld [vmem:[%s1824_s1 + $0xc0] sm:$0xf] }
  0x16   : > { %556 = vmatpush.bf16.msra.mxu0 %v958_v3  ;;  %v1090_v12 = vor.u32 %v1170_v9, %v1087_v10  ;;  %v1136_v13 = vld [vmem:[%s1824_s1 + $0xcc] sm:$0xf0]  ;;  %v1069_v14 = vld [vmem:[%s1824_s1 + $0x1c0] sm:$0xf]  ;;  %v1134_v18 = vld [vmem:[%s1824_s1 + $0xc4] sm:$0xf] }
  0x17   : > { %v1168_v15 = vld [vmem:[%s1824_s1 + $0x1cc] sm:$0xf0]  ;;  %575 = vmatpush.bf16.msra.mxu1 %v1086_v7  ;;  %594 = vmatpush.bf16.msra.mxu2 %v962_v8  ;;  %v942_v16 = vor.u32 %v1136_v13, %v941_v11  ;;  %v943_v19 = vld [vmem:[%s1824_s1 + $0xd0] sm:$0xf0]  ;;  %v1166_v20 = vld [vmem:[%s1824_s1 + $0x1c4] sm:$0xf] }
  0x18   : > { %v1070_v17 = vor.u32 %v1168_v15, %v1069_v14  ;;  %613 = vmatpush.bf16.msra.mxu3 %v1090_v12  ;;  %v946_v21 = vor.u32 %v1134_v18, %v943_v19  ;;  %v1071_v22 = vld [vmem:[%s1824_s1 + $0x1d0] sm:$0xf0]  ;;  %v925_v23 = vld [vmem:[%s1824_s1 + $0xa0] sm:$0xf]  ;;  %v1132_v24 = vld [vmem:[%s1824_s1 + $0xac] sm:$0xf0] }
  0x19   : > { %v1074_v25 = vor.u32 %v1166_v20, %v1071_v22  ;;  %v1053_v26 = vld [vmem:[%s1824_s1 + $0x1a0] sm:$0xf]  ;;  %v1164_v27 = vld [vmem:[%s1824_s1 + $0x1ac] sm:$0xf0]  ;;  %v1130_v28 = vld [vmem:[%s1824_s1 + $0xa4] sm:$0xf]  ;;  %v926_v29 = vor.u32 %v1132_v24, %v925_v23 }
  0x1a   : > { %557 = vmatpush.bf16.msra.mxu0 %v942_v16  ;;  %v927_v30 = vld [vmem:[%s1824_s1 + $0xb0] sm:$0xf0]  ;;  %v1162_v31 = vld [vmem:[%s1824_s1 + $0x1a4] sm:$0xf]  ;;  %v1054_v33 = vor.u32 %v1164_v27, %v1053_v26  ;;  %v909_v35 = vld [vmem:[%s1824_s1 + $0x80] sm:$0xf] }
  0x1b   : > { %v1055_v32 = vld [vmem:[%s1824_s1 + $0x1b0] sm:$0xf0]  ;;  %576 = vmatpush.bf16.msra.mxu1 %v1070_v17  ;;  %595 = vmatpush.bf16.msra.mxu2 %v946_v21  ;;  %v930_v34 = vor.u32 %v1130_v28, %v927_v30  ;;  %v1128_v36 = vld [vmem:[%s1824_s1 + $0x8c] sm:$0xf0]  ;;  %v1037_v37 = vld [vmem:[%s1824_s1 + $0x180] sm:$0xf] }
  0x1c   : > { %614 = vmatpush.bf16.msra.mxu3 %v1074_v25  ;;  %v1058_v38 = vor.u32 %v1162_v31, %v1055_v32  ;;  %v1160_v39 = vld [vmem:[%s1824_s1 + $0x18c] sm:$0xf0]  ;;  %v1126_v40 = vld [vmem:[%s1824_s1 + $0x84] sm:$0xf]  ;;  %v911_v41 = vld [vmem:[%s1824_s1 + $0x90] sm:$0xf0]  ;;  %v910_v44 = vor.u32 %v1128_v36, %v909_v35 }
  0x1d   : > { %v1158_v42 = vld [vmem:[%s1824_s1 + $0x184] sm:$0xf]  ;;  %v1039_v43 = vld [vmem:[%s1824_s1 + $0x190] sm:$0xf0]  ;;  %v1038_v45 = vor.u32 %v1160_v39, %v1037_v37  ;;  %v914_v46 = vor.u32 %v1126_v40, %v911_v41  ;;  %v893_v47 = vld [vmem:[%s1824_s1 + $0x60] sm:$0xf] }
  0x1e   : > { %558 = vmatpush.bf16.msra.mxu0 %v926_v29  ;;  %v1124_v48 = vld [vmem:[%s1824_s1 + $0x6c] sm:$0xf0]  ;;  %v1021_v49 = vld [vmem:[%s1824_s1 + $0x160] sm:$0xf]  ;;  %v1042_v50 = vor.u32 %v1158_v42, %v1039_v43  ;;  %v1122_v52 = vld [vmem:[%s1824_s1 + $0x64] sm:$0xf] }
  0x1f   : > { %577 = vmatpush.bf16.msra.mxu1 %v1054_v33  ;;  %596 = vmatpush.bf16.msra.mxu2 %v930_v34  ;;  %v1156_v51 = vld [vmem:[%s1824_s1 + $0x16c] sm:$0xf0]  ;;  %v895_v53 = vld [vmem:[%s1824_s1 + $0x70] sm:$0xf0]  ;;  %v1154_v54 = vld [vmem:[%s1824_s1 + $0x164] sm:$0xf]  ;;  %v894_v56 = vor.u32 %v1124_v48, %v893_v47 }
  0x20   : > { %615 = vmatpush.bf16.msra.mxu3 %v1058_v38  ;;  %v1023_v55 = vld [vmem:[%s1824_s1 + $0x170] sm:$0xf0]  ;;  %v1022_v57 = vor.u32 %v1156_v51, %v1021_v49  ;;  %v898_v58 = vor.u32 %v1122_v52, %v895_v53  ;;  %v877_v59 = vld [vmem:[%s1824_s1 + $0x40] sm:$0xf]  ;;  %v1120_v60 = vld [vmem:[%s1824_s1 + $0x4c] sm:$0xf0] }
  0x21   : > { %v1005_v61 = vld [vmem:[%s1824_s1 + $0x140] sm:$0xf]  ;;  %v1026_v62 = vor.u32 %v1154_v54, %v1023_v55  ;;  %v1152_v63 = vld [vmem:[%s1824_s1 + $0x14c] sm:$0xf0]  ;;  %v1118_v0 = vld [vmem:[%s1824_s1 + $0x44] sm:$0xf]  ;;  %v878_v4 = vor.u32 %v1120_v60, %v877_v59 }
  0x22   : > { %559 = vmatpush.bf16.msra.mxu0 %v910_v44  ;;  %v879_v1 = vld [vmem:[%s1824_s1 + $0x50] sm:$0xf0]  ;;  %v1150_v2 = vld [vmem:[%s1824_s1 + $0x144] sm:$0xf]  ;;  %v861_v5 = vld [vmem:[%s1824_s1 + $0x20] sm:$0xf]  ;;  %v1006_v6 = vor.u32 %v1152_v63, %v1005_v61 }
  0x23   : > { %578 = vmatpush.bf16.msra.mxu1 %v1038_v45  ;;  %597 = vmatpush.bf16.msra.mxu2 %v914_v46  ;;  %v1007_v3 = vld [vmem:[%s1824_s1 + $0x150] sm:$0xf0]  ;;  %v882_v7 = vor.u32 %v1118_v0, %v879_v1  ;;  %v1116_v8 = vld [vmem:[%s1824_s1 + $0x2c] sm:$0xf0]  ;;  %v989_v9 = vld [vmem:[%s1824_s1 + $0x120] sm:$0xf] }
  0x24   : > { %616 = vmatpush.bf16.msra.mxu3 %v1042_v50  ;;  %v1148_v10 = vld [vmem:[%s1824_s1 + $0x12c] sm:$0xf0]  ;;  %v1010_v11 = vor.u32 %v1150_v2, %v1007_v3  ;;  %v1114_v12 = vld [vmem:[%s1824_s1 + $0x24] sm:$0xf]  ;;  %v863_v13 = vld [vmem:[%s1824_s1 + $0x30] sm:$0xf0]  ;;  %v862_v16 = vor.u32 %v1116_v8, %v861_v5 }
  0x25   : > { %v1146_v14 = vld [vmem:[%s1824_s1 + $0x124] sm:$0xf]  ;;  %v991_v15 = vld [vmem:[%s1824_s1 + $0x130] sm:$0xf0]  ;;  %v845_v17 = vld [vmem:[%s1824_s1] sm:$0xf]  ;;  %v990_v20 = vor.u32 %v1148_v10, %v989_v9  ;;  %v866_v21 = vor.u32 %v1114_v12, %v863_v13 }
  0x26   : > { %560 = vmatpush.bf16.msra.mxu0 %v894_v56  ;;  %v1112_v18 = vld [vmem:[%s1824_s1 + $0xc] sm:$0xf0]  ;;  %v973_v19 = vld [vmem:[%s1824_s1 + $0x100] sm:$0xf]  ;;  %v1110_v23 = vld [vmem:[%s1824_s1 + $0x4] sm:$0xf]  ;;  %v994_v24 = vor.u32 %v1146_v14, %v991_v15 }
  0x27   : > { %579 = vmatpush.bf16.msra.mxu1 %v1022_v57  ;;  %598 = vmatpush.bf16.msra.mxu2 %v898_v58  ;;  %v1144_v22 = vld [vmem:[%s1824_s1 + $0x10c] sm:$0xf0]  ;;  %s1833_s6 = smov (!%p141_p10, %s824_s6), 7  ;;  %v847_v25 = vld [vmem:[%s1824_s1 + $0x10] sm:$0xf0]  ;;  %v846_v30 = vor.u32 %v1112_v18, %v845_v17 }
  0x28   : > { %617 = vmatpush.bf16.msra.mxu3 %v1026_v62  ;;  %v1142_v26 = vld [vmem:[%s1824_s1 + $0x104] sm:$0xf]  ;;  %v975_v27 = vld [vmem:[%s1824_s1 + $0x110] sm:$0xf0]  ;;  %s1105_s14 = sshll.u32 %s1833_s6, 3  ;;  %v974_v34 = vor.u32 %v1144_v22, %v973_v19  ;;  %v850_v35 = vor.u32 %v1110_v23, %v847_v25  ;;  %s756_s6 = sshll.u32 %s753_s27, 4  ;;  %s757_s6 = int_to_ptr.hbm [resolvable:$true] %s756_s6 }
  0x29   : > { %v1139_v28 = vld [vmem:[%s1824_s1 + $0xec] sm:$0xf]  ;;  %v967_v29 = vld [vmem:[%s1824_s1 + $0xf8] sm:$0xf0]  ;;  %s1548_s25 = scalar_lea.vmem %s1823_s0, %s1105_s14  ;;  %v965_v33 = vld [vmem:[%s1824_s1 + $0xe8] sm:$0xf]  ;;  %v978_v39 = vor.u32 %v1142_v26, %v975_v27 }
  0x2a   : > { %561 = vmatpush.bf16.msra.mxu0 %v878_v4  ;;  %v1171_v31 = vld [vmem:[%s1824_s1 + $0x1ec] sm:$0xf]  ;;  %v1095_v32 = vld [vmem:[%s1824_s1 + $0x1f8] sm:$0xf0]  ;;  %v829_v36 = vld [vmem:[%s1548_s25] sm:$0xf]  ;;  %v970_v41 = vor.u32 %v1139_v28, %v967_v29 }
  0x2b   : > { %580 = vmatpush.bf16.msra.mxu1 %v1006_v6  ;;  %599 = vmatpush.bf16.msra.mxu2 %v882_v7  ;;  %v1107_v37 = vld [vmem:[%s1548_s25 + $0x4] sm:$0xf0]  ;;  %v1106_v38 = vld [vmem:[%s1548_s25 + $0x4] sm:$0xf]  ;;  %v831_v40 = vld [vmem:[%s1548_s25 + $0x8] sm:$0xf0]  ;;  %v1098_v45 = vor.u32 %v1171_v31, %v1095_v32 }
  0x2c   : > { %618 = vmatpush.bf16.msra.mxu3 %v1010_v11  ;;  %v1141_v42 = vld [vmem:[%s1824_s1 + $0xf4] sm:$0xf0]  ;;  %v1093_v43 = vld [vmem:[%s1824_s1 + $0x1e8] sm:$0xf]  ;;  %v1569_v44 = vor.u32 %v1107_v37, %v829_v36  ;;  %v1135_v47 = vld [vmem:[%s1824_s1 + $0xcc] sm:$0xf]  ;;  %v1580_v49 = vor.u32 %v1106_v38, %v831_v40 }
  0x2d   : > { %v1173_v46 = vld [vmem:[%s1824_s1 + $0x1f4] sm:$0xf0]  ;;  %v951_v48 = vld [vmem:[%s1824_s1 + $0xd8] sm:$0xf0]  ;;  %v1167_v50 = vld [vmem:[%s1824_s1 + $0x1cc] sm:$0xf]  ;;  %v966_v52 = vor.u32 %v1141_v42, %v965_v33 }
  0x2e   : > { %562 = vmatpush.bf16.msra.mxu0 %v862_v16  ;;  %v1079_v51 = vld [vmem:[%s1824_s1 + $0x1d8] sm:$0xf0]  ;;  %v1094_v53 = vor.u32 %v1173_v46, %v1093_v43  ;;  %v954_v54 = vor.u32 %v1135_v47, %v951_v48  ;;  %v949_v55 = vld [vmem:[%s1824_s1 + $0xc8] sm:$0xf]  ;;  %v1137_v56 = vld [vmem:[%s1824_s1 + $0xd4] sm:$0xf0] }
  0x2f   : > { %581 = vmatpush.bf16.msra.mxu1 %v990_v20  ;;  %600 = vmatpush.bf16.msra.mxu2 %v866_v21  ;;  %v1077_v57 = vld [vmem:[%s1824_s1 + $0x1c8] sm:$0xf]  ;;  %v1082_v58 = vor.u32 %v1167_v50, %v1079_v51  ;;  %v1169_v59 = vld [vmem:[%s1824_s1 + $0x1d4] sm:$0xf0]  ;;  %v1131_v60 = vld [vmem:[%s1824_s1 + $0xac] sm:$0xf]  ;;  %v950_v0 = vor.u32 %v1137_v56, %v949_v55 }
  0x30   : > { %619 = vmatpush.bf16.msra.mxu3 %v994_v24  ;;  %v935_v61 = vld [vmem:[%s1824_s1 + $0xb8] sm:$0xf0]  ;;  %v1163_v62 = vld [vmem:[%s1824_s1 + $0x1ac] sm:$0xf]  ;;  %v1078_v1 = vor.u32 %v1169_v59, %v1077_v57  ;;  %v933_v3 = vld [vmem:[%s1824_s1 + $0xa8] sm:$0xf] }
  0x31   : > { %v1063_v63 = vld [vmem:[%s1824_s1 + $0x1b8] sm:$0xf0]  ;;  %v938_v2 = vor.u32 %v1131_v60, %v935_v61  ;;  %v1133_v4 = vld [vmem:[%s1824_s1 + $0xb4] sm:$0xf0]  ;;  %v1061_v5 = vld [vmem:[%s1824_s1 + $0x1a8] sm:$0xf] }
  0x32   : > { %563 = vmatpush.bf16.msra.mxu0 %v846_v30  ;;  %v1066_v6 = vor.u32 %v1163_v62, %v1063_v63  ;;  %v1165_v7 = vld [vmem:[%s1824_s1 + $0x1b4] sm:$0xf0]  ;;  %v1127_v8 = vld [vmem:[%s1824_s1 + $0x8c] sm:$0xf]  ;;  %v919_v9 = vld [vmem:[%s1824_s1 + $0x98] sm:$0xf0]  ;;  %v934_v12 = vor.u32 %v1133_v4, %v933_v3 }
  0x33   : > { %582 = vmatpush.bf16.msra.mxu1 %v974_v34  ;;  %601 = vmatpush.bf16.msra.mxu2 %v850_v35  ;;  %v1159_v10 = vld [vmem:[%s1824_s1 + $0x18c] sm:$0xf]  ;;  %v1047_v11 = vld [vmem:[%s1824_s1 + $0x198] sm:$0xf0]  ;;  %v917_v13 = vld [vmem:[%s1824_s1 + $0x88] sm:$0xf]  ;;  %v1062_v14 = vor.u32 %v1165_v7, %v1061_v5  ;;  %v922_v15 = vor.u32 %v1127_v8, %v919_v9 }
  0x34   : > { %620 = vmatpush.bf16.msra.mxu3 %v978_v39  ;;  %v1129_v16 = vld [vmem:[%s1824_s1 + $0x94] sm:$0xf0]  ;;  %v1045_v17 = vld [vmem:[%s1824_s1 + $0x188] sm:$0xf]  ;;  %v1050_v19 = vor.u32 %v1159_v10, %v1047_v11  ;;  %v837_v20 = vld [vmem:[%s1548_s25 + $0x10] sm:$0xf] }
  0x35   : > { %564 = vmatmul.bf16.vlgmr.msra.gmra.mxu0 %v1569_v44  ;;  %v1161_v18 = vld [vmem:[%s1824_s1 + $0x194] sm:$0xf0]  ;;  %v1123_v21 = vld [vmem:[%s1824_s1 + $0x6c] sm:$0xf]  ;;  %v903_v22 = vld [vmem:[%s1824_s1 + $0x78] sm:$0xf0]  ;;  %v918_v26 = vor.u32 %v1129_v16, %v917_v13 }
  0x36   : > { %583 = vmatmul.bf16.vlgmr.msra.gmra.mxu1 %v1580_v49  ;;  %602 = vmatmul.bf16.vlgmr.msra.gmra.mxu2 %v1569_v44  ;;  %v1109_v23 = vld [vmem:[%s1548_s25 + $0x14] sm:$0xf0]  ;;  %v1155_v24 = vld [vmem:[%s1824_s1 + $0x16c] sm:$0xf]  ;;  %v1031_v25 = vld [vmem:[%s1824_s1 + $0x178] sm:$0xf0]  ;;  %v1046_v29 = vor.u32 %v1161_v18, %v1045_v17  ;;  %v906_v30 = vor.u32 %v1123_v21, %v903_v22 }
  0x37   : > { %670 = vmatpush.bf16.msrb.mxu2 %v970_v41  ;;  %621 = vmatmul.bf16.vlgmr.msra.gmra.mxu3 %v1580_v49  ;;  %v1108_v27 = vld [vmem:[%s1548_s25 + $0x14] sm:$0xf]  ;;  %v839_v28 = vld [vmem:[%s1548_s25 + $0x18] sm:$0xf0]  ;;  %v901_v31 = vld [vmem:[%s1824_s1 + $0x68] sm:$0xf]  ;;  %v1677_v34 = vor.u32 %v1109_v23, %v837_v20  ;;  %v1034_v35 = vor.u32 %v1155_v24, %v1031_v25 }
  0x38   : > { %689 = vmatpush.bf16.msrb.mxu3 %v1098_v45  ;;  %632 = vmatpush.bf16.msrb.mxu0 %v966_v52  ;;  %v1125_v32 = vld [vmem:[%s1824_s1 + $0x74] sm:$0xf0]  ;;  %v1029_v33 = vld [vmem:[%s1824_s1 + $0x168] sm:$0xf]  ;;  %v1119_v37 = vld [vmem:[%s1824_s1 + $0x4c] sm:$0xf]  ;;  %v1688_v39 = vor.u32 %v1108_v27, %v839_v28 }
  0x39   : > { %651 = vmatpush.bf16.msrb.mxu1 %v1094_v53  ;;  %v1157_v36 = vld [vmem:[%s1824_s1 + $0x174] sm:$0xf0]  ;;  %v887_v38 = vld [vmem:[%s1824_s1 + $0x58] sm:$0xf0]  ;;  %v1151_v40 = vld [vmem:[%s1824_s1 + $0x14c] sm:$0xf]  ;;  %v902_v42 = vor.u32 %v1125_v32, %v901_v31 }
  0x3a   : > { %v1015_v41 = vld [vmem:[%s1824_s1 + $0x158] sm:$0xf0]  ;;  %v1030_v43 = vor.u32 %v1157_v36, %v1029_v33  ;;  %v890_v45 = vor.u32 %v1119_v37, %v887_v38  ;;  %v885_v46 = vld [vmem:[%s1824_s1 + $0x48] sm:$0xf]  ;;  %v1121_v47 = vld [vmem:[%s1824_s1 + $0x54] sm:$0xf0] }
  0x3b   : > { %671 = vmatpush.bf16.msrb.mxu2 %v954_v54  ;;  %v1013_v48 = vld [vmem:[%s1824_s1 + $0x148] sm:$0xf]  ;;  %v1018_v50 = vor.u32 %v1151_v40, %v1015_v41  ;;  %v1153_v51 = vld [vmem:[%s1824_s1 + $0x154] sm:$0xf0]  ;;  %v1115_v52 = vld [vmem:[%s1824_s1 + $0x2c] sm:$0xf]  ;;  %v886_v56 = vor.u32 %v1121_v47, %v885_v46 }
  0x3c   : > { %690 = vmatpush.bf16.msrb.mxu3 %v1082_v58  ;;  %633 = vmatpush.bf16.msrb.mxu0 %v950_v0  ;;  %v871_v53 = vld [vmem:[%s1824_s1 + $0x38] sm:$0xf0]  ;;  %v1147_v54 = vld [vmem:[%s1824_s1 + $0x12c] sm:$0xf]  ;;  %v1014_v57 = vor.u32 %v1153_v51, %v1013_v48  ;;  %v869_v59 = vld [vmem:[%s1824_s1 + $0x28] sm:$0xf] }
  0x3d   : > { %652 = vmatpush.bf16.msrb.mxu1 %v1078_v1  ;;  %v999_v55 = vld [vmem:[%s1824_s1 + $0x138] sm:$0xf0]  ;;  %v874_v58 = vor.u32 %v1115_v52, %v871_v53  ;;  %v1117_v60 = vld [vmem:[%s1824_s1 + $0x34] sm:$0xf0]  ;;  %v997_v61 = vld [vmem:[%s1824_s1 + $0x128] sm:$0xf] }
  0x3e   : > { %v1002_v62 = vor.u32 %v1147_v54, %v999_v55  ;;  %v1149_v63 = vld [vmem:[%s1824_s1 + $0x134] sm:$0xf0]  ;;  %v1111_v0 = vld [vmem:[%s1824_s1 + $0xc] sm:$0xf]  ;;  %v855_v1 = vld [vmem:[%s1824_s1 + $0x18] sm:$0xf0]  ;;  %v870_v4 = vor.u32 %v1117_v60, %v869_v59 }
  0x3f   : > { %672 = vmatpush.bf16.msrb.mxu2 %v938_v2  ;;  %v1143_v2 = vld [vmem:[%s1824_s1 + $0x10c] sm:$0xf]  ;;  %v983_v3 = vld [vmem:[%s1824_s1 + $0x118] sm:$0xf0]  ;;  %v998_v5 = vor.u32 %v1149_v63, %v997_v61  ;;  %v853_v7 = vld [vmem:[%s1824_s1 + $0x8] sm:$0xf] }
  0x40   : > { %691 = vmatpush.bf16.msrb.mxu3 %v1066_v6  ;;  %634 = vmatpush.bf16.msrb.mxu0 %v934_v12  ;;  %v858_v6 = vor.u32 %v1111_v0, %v855_v1  ;;  %v1113_v8 = vld [vmem:[%s1824_s1 + $0x14] sm:$0xf0]  ;;  %v986_v9 = vor.u32 %v1143_v2, %v983_v3  ;;  %v981_v10 = vld [vmem:[%s1824_s1 + $0x108] sm:$0xf]  ;;  %s754_s25 = sshll.u32 %s1771_s22, 4  ;;  %s1231_s28 = sshra.s32 %s757_s6, 4  ;;  %s755_s25 = int_to_ptr.vmem [resolvable:$true] %s754_s25  ;;  %s1232_s28 = int_to_ptr.hbm [resolvable:$true] %s1231_s28 }
  0x41   : > { %653 = vmatpush.bf16.msrb.mxu1 %v1062_v14  ;;  %v1145_v11 = vld [vmem:[%s1824_s1 + $0x114] sm:$0xf0]  ;;  %v854_v12 = vor.u32 %v1113_v8, %v853_v7  ;;  %s1233_s29 = scalar_lea.hbm %s1232_s28, 128  ;;  %p1238_p0 = scmp.lt.s32.totalorder %s1232_s28, %s1825_s2 }
  0x42   : > { %v982_v13 = vor.u32 %v1145_v11, %v981_v10  ;;  %p1234_p11 = scmp.ne.s32.totalorder %s1232_s28, %s1233_s29  ;;  %p1239_p1 = scmp.lt.s32.totalorder %s1237_s4, %s1233_s29 }
  0x43   : > { %673 = vmatpush.bf16.msrb.mxu2 %v922_v15 }
  0x44   : > { %692 = vmatpush.bf16.msrb.mxu3 %v1050_v19  ;;  %635 = vmatpush.bf16.msrb.mxu0 %v918_v26  ;;  %p1235_p12 = pnand %p1234_p11, %p1336_p5  ;;  %p1240_p2 = por %p1239_p1, %p1238_p0 }
  0x45   : > { %654 = vmatpush.bf16.msrb.mxu1 %v1046_v29  ;;  %569 = vmatmul.bf16.gmra.mxu0 %v1677_v34 }
  0x46   : > { %588 = vmatmul.bf16.gmra.mxu1 %v1688_v39  ;;  %607 = vmatmul.bf16.gmra.mxu2 %v1677_v34  ;;  %p1236_p13 = pneg %p1235_p12 }
  0x47   : > { %674 = vmatpush.bf16.msrb.mxu2 %v906_v30  ;;  %626 = vmatmul.bf16.gmra.mxu3 %v1688_v39 }
  0x48   : > { %693 = vmatpush.bf16.msrb.mxu3 %v1034_v35  ;;  %636 = vmatpush.bf16.msrb.mxu0 %v902_v42  ;;  %p1241_p3 = pnand %p1240_p2, %p1236_p13 }
  0x49   : > { %655 = vmatpush.bf16.msrb.mxu1 %v1030_v43 }
  0x4b   : > { %675 = vmatpush.bf16.msrb.mxu2 %v890_v45 }
  0x4c   : > { %694 = vmatpush.bf16.msrb.mxu3 %v1018_v50  ;;  %637 = vmatpush.bf16.msrb.mxu0 %v886_v56 }
  0x4d   : > { %656 = vmatpush.bf16.msrb.mxu1 %v1014_v57 }
  0x4f   : > { %676 = vmatpush.bf16.msrb.mxu2 %v874_v58 }
  0x50   : > { %695 = vmatpush.bf16.msrb.mxu3 %v1002_v62  ;;  %638 = vmatpush.bf16.msrb.mxu0 %v870_v4 }
  0x51   : > { %657 = vmatpush.bf16.msrb.mxu1 %v998_v5 }
  0x53   : > { %677 = vmatpush.bf16.msrb.mxu2 %v858_v6 }
  0x54   : > { %696 = vmatpush.bf16.msrb.mxu3 %v986_v9  ;;  %639 = vmatpush.bf16.msrb.mxu0 %v854_v12 }
  0x55   : > { %658 = vmatpush.bf16.msrb.mxu1 %v982_v13 }
  0x56   : > { %678 = vmatmul.bf16.vlgmr.msrb.gmra.mxu2 %v1569_v44 }
  0x57   : > { %640 = vmatmul.bf16.vlgmr.msrb.gmra.mxu0 %v1569_v44  ;;  %697 = vmatmul.bf16.vlgmr.msrb.gmra.mxu3 %v1580_v49 }
  0x58   : > { %659 = vmatmul.bf16.vlgmr.msrb.gmra.mxu1 %v1580_v49 }
  0x66   : > { %683 = vmatmul.bf16.gmra.mxu2 %v1677_v34 }
  0x67   : > { %645 = vmatmul.bf16.gmra.mxu0 %v1677_v34  ;;  %702 = vmatmul.bf16.gmra.mxu3 %v1688_v39 }
  0x68   : > { %664 = vmatmul.bf16.gmra.mxu1 %v1688_v39 }
  0xb2   : > { %v565_v14 = vpop.f32.mrf.mxu0 }
  0xb3   : > { %v584_v15 = vpop.f32.mrf.mxu1 }
  0xb4   : > { %v585_v16 = vadd.f32 %v584_v15, %v565_v14 }
  0xb6   : > { %v708_v17 = vmax.f32 %v585_v16, 0.0 }
  0xb8   : > { %724 = vst [vmem:[%s1771_s22] sm:$0xff] %v708_v17 }
  0xb9   : > { %v603_v44 = vpop.f32.mrf.mxu2 }
  0xba   : > { %v622_v49 = vpop.f32.mrf.mxu3  ;;  %v567_v18 = vpop.f32.mrf.mxu0 }
  0xbb   : > { %v623_v19 = vadd.f32 %v622_v49, %v603_v44  ;;  %v586_v20 = vpop.f32.mrf.mxu1 }
  0xbc   : > { %v587_v21 = vadd.f32 %v586_v20, %v567_v18 }
  0xbd   : > { %v709_v22 = vmax.f32 %v623_v19, 0.0 }
  0xbe   : > { %v712_v23 = vmax.f32 %v587_v21, 0.0 }
  0xbf   : > { %725 = vst [vmem:[%s1771_s22 + $0x8] sm:$0xff] %v709_v22 }
  0xc0   : > { %728 = vst [vmem:[%s1771_s22 + $0x20] sm:$0xff] %v712_v23 }
  0xc1   : > { %v605_v24 = vpop.f32.mrf.mxu2 }
  0xc2   : > { %v624_v25 = vpop.f32.mrf.mxu3  ;;  %v570_v26 = vpop.f32.mrf.mxu0 }
  0xc3   : > { %v625_v27 = vadd.f32 %v624_v25, %v605_v24  ;;  %v589_v28 = vpop.f32.mrf.mxu1 }
  0xc4   : > { %v590_v29 = vadd.f32 %v589_v28, %v570_v26 }
  0xc5   : > { %v713_v30 = vmax.f32 %v625_v27, 0.0 }
  0xc6   : > { %v716_v31 = vmax.f32 %v590_v29, 0.0 }
  0xc7   : > { %729 = vst [vmem:[%s1771_s22 + $0x28] sm:$0xff] %v713_v30 }
  0xc8   : > { %732 = vst [vmem:[%s1771_s22 + $0x40] sm:$0xff] %v716_v31 }
  0xc9   : > { %v608_v32 = vpop.f32.mrf.mxu2 }
  0xca   : > { %v627_v33 = vpop.f32.mrf.mxu3  ;;  %v572_v34 = vpop.f32.mrf.mxu0 }
  0xcb   : > { %v628_v35 = vadd.f32 %v627_v33, %v608_v32  ;;  %v591_v36 = vpop.f32.mrf.mxu1 }
  0xcc   : > { %v592_v37 = vadd.f32 %v591_v36, %v572_v34 }
  0xcd   : > { %v717_v38 = vmax.f32 %v628_v35, 0.0 }
  0xce   : > { %v720_v39 = vmax.f32 %v592_v37, 0.0 }
  0xcf   : > { %733 = vst [vmem:[%s1771_s22 + $0x48] sm:$0xff] %v717_v38 }
  0xd0   : > { %736 = vst [vmem:[%s1771_s22 + $0x60] sm:$0xff] %v720_v39 }
  0xd1   : > { %v610_v40 = vpop.f32.mrf.mxu2 }
  0xd2   : > { %v629_v41 = vpop.f32.mrf.mxu3 }
  0xd3   : > { %v630_v42 = vadd.f32 %v629_v41, %v610_v40 }
  0xd4   : > { %v641_v43 = vpop.f32.mrf.mxu0 }
  0xd5   : > { %v660_v45 = vpop.f32.mrf.mxu1  ;;  %v721_v46 = vmax.f32 %v630_v42, 0.0 }
  0xd6   : > { %v661_v47 = vadd.f32 %v660_v45, %v641_v43 }
  0xd7   : > { %737 = vst [vmem:[%s1771_s22 + $0x68] sm:$0xff] %v721_v46 }
  0xd8   : > { %v710_v48 = vmax.f32 %v661_v47, 0.0 }
  0xd9   : > { %v679_v50 = vpop.f32.mrf.mxu2 }
  0xda   : > { %726 = vst [vmem:[%s1771_s22 + $0x10] sm:$0xff] %v710_v48  ;;  %v698_v51 = vpop.f32.mrf.mxu3 }
  0xdb   : > { %v699_v52 = vadd.f32 %v698_v51, %v679_v50 }
  0xdc   : > { %v643_v53 = vpop.f32.mrf.mxu0 }
  0xdd   : > { %v662_v54 = vpop.f32.mrf.mxu1  ;;  %v711_v55 = vmax.f32 %v699_v52, 0.0 }
  0xde   : > { %v663_v56 = vadd.f32 %v662_v54, %v643_v53 }
  0xdf   : > { %727 = vst [vmem:[%s1771_s22 + $0x18] sm:$0xff] %v711_v55 }
  0xe0   : > { %v714_v57 = vmax.f32 %v663_v56, 0.0 }
  0xe1   : > { %v681_v58 = vpop.f32.mrf.mxu2 }
  0xe2   : > { %730 = vst [vmem:[%s1771_s22 + $0x30] sm:$0xff] %v714_v57  ;;  %v700_v59 = vpop.f32.mrf.mxu3 }
  0xe3   : > { %v701_v60 = vadd.f32 %v700_v59, %v681_v58 }
  0xe4   : > { %v646_v61 = vpop.f32.mrf.mxu0 }
  0xe5   : > { %v665_v62 = vpop.f32.mrf.mxu1  ;;  %v715_v63 = vmax.f32 %v701_v60, 0.0 }
  0xe6   : > { %v666_v0 = vadd.f32 %v665_v62, %v646_v61 }
  0xe7   : > { %731 = vst [vmem:[%s1771_s22 + $0x38] sm:$0xff] %v715_v63 }
  0xe8   : > { %v718_v1 = vmax.f32 %v666_v0, 0.0 }
  0xe9   : > { %v684_v2 = vpop.f32.mrf.mxu2 }
  0xea   : > { %734 = vst [vmem:[%s1771_s22 + $0x50] sm:$0xff] %v718_v1  ;;  %v703_v3 = vpop.f32.mrf.mxu3 }
  0xeb   : > { %v704_v4 = vadd.f32 %v703_v3, %v684_v2 }
  0xec   : > { %v648_v5 = vpop.f32.mrf.mxu0 }
  0xed   : > { %v667_v6 = vpop.f32.mrf.mxu1  ;;  %v719_v7 = vmax.f32 %v704_v4, 0.0 }
  0xee   : > { %v668_v8 = vadd.f32 %v667_v6, %v648_v5 }
  0xef   : > { %735 = vst [vmem:[%s1771_s22 + $0x58] sm:$0xff] %v719_v7 }
  0xf0   : > { %v722_v9 = vmax.f32 %v668_v8, 0.0 }
  0xf1   : > { %v686_v10 = vpop.f32.mrf.mxu2 }
  0xf2   : > { %738 = vst [vmem:[%s1771_s22 + $0x70] sm:$0xff] %v722_v9  ;;  %v705_v11 = vpop.f32.mrf.mxu3 }
  0xf3   : > { %v706_v12 = vadd.f32 %v705_v11, %v686_v10 }
  0xf5   : > { %v723_v13 = vmax.f32 %v706_v12, 0.0 }
  0xf7   : > { %739 = vst [vmem:[%s1771_s22 + $0x78] sm:$0xff] %v723_v13 }
  0xf8   : > { %1244 = shalt.err (!%p1241_p3)
}
  0xf9   : > { %s1281_s8 = smov 512   ;;  %s1282_s14 = smov 32  }
  0xfa   : > { %1176 = dma.vmem_to_hbm [thread:$0]  (%p1336_p5), %s755_s25, 2048, %s757_s6, %s741_s13, %s1281_s8, %s1281_s8, %s1282_s14  }
  0xfb PF: > { %p1182_p4 = scmp.ge.s32.totalorder %s1279_s12, 2  ;;  %s771_s16 = sand.u32 1, %s1267_s9  }
  0xfc   : > { %s772_s17 = scalar_lea.sflag [#allocation3], %s771_s16 }
  0xfd   : > { %p1179_p7 = pnand %p1182_p4, %p1340_p6 }
  0xff   : > { %p1180_p8 = pneg %p1179_p7 }
 0x101   : > { %1262 = dma.done.wait (%p1180_p8), %s772_s17, 2048  }
 0x102   : > { %1264 = vsyncadd (%p1180_p8), %s772_s17, 4294965248  ;;  %p12_p9 = scmp.ge.s32.totalorder %s1323_s15, 4   ;;  %s1828_s9 = smov %s1271_s10 }
 0x103   : > { %s1829_s10 = smov %s1275_s11  ;;  %s1830_s11 = smov %s1334_s18 }
 0x104   : > { %s1831_s12 = smov %s1323_s15  ;;  %14 = sbr.rel (!%p12_p9) target bundleno = 3 (0x3), region = 63 }
 0x109   :  { %778 = vsyncpa [#allocation3], 1 }
 0x10a   :  { %780 = vsyncpa [#allocation3 + $0x1], 1 }

</bundles_post_ra>
